<compile_context>
chip_gen: v6e
topology: v6e:2x2x1
jax: 0.10.0
libtpu: 0.0.40
codegen_flags: <defaults>
</compile_context>

<pallas_src>
import functools
import math

import jax
import jax.numpy as jnp
from jax.experimental import pallas as pl
from jax.experimental.pallas import tpu as pltpu


def _copy_decoder_kernel(src_ref, dec_ref, enc_ref, p1_ref,
                         wqg_ref, bqg_ref, wk_ref, bk_ref,
                         out_ref, attn_sc, gate_sc, zinv_sc,
                         *, num_heads, d_k, vocab, v_tile, num_v_tiles):
    v_idx = pl.program_id(2)
    hk = num_heads * d_k
    v_pad = num_v_tiles * v_tile

    # ---- per-(batch, dec-tile) prologue: projections, attention, gate, denominator --
    @pl.when(v_idx == 0)
    def _prologue():
        dec = dec_ref[0]                       # (ts,    D)  bf16
        enc = enc_ref[0]                       # (S_enc, D)  bf16
        src = src_ref[0]                       # (S_enc, 1)  int32

        # Flat fused projections (one wide MXU matmul each).
        # wqg = [fcQ.Wq * 1/sqrt(d_k) | fcw] so the gate logit rides the Q matmul.
        qg = jnp.dot(dec, wqg_ref[...], preferred_element_type=jnp.float32) + bqg_ref[...]
        kf = jnp.dot(enc, wk_ref[...], preferred_element_type=jnp.float32) + bk_ref[...]

        gate_sc[...] = jax.nn.sigmoid(qg[:, hk:hk + 1])                 # (ts, 1)

        q_bf = qg[:, :hk].astype(jnp.bfloat16)
        k_bf = kf.astype(jnp.bfloat16)

        # Per-head scaled-dot-product probabilities, averaged over heads.
        # (score scale already folded into the fused Q weight)
        attn = jnp.zeros((dec.shape[0], enc.shape[0]), jnp.float32)
        for h in range(num_heads):
            qh = q_bf[:, h * d_k:(h + 1) * d_k]
            kh = k_bf[:, h * d_k:(h + 1) * d_k]
            s = jax.lax.dot_general(qh, kh, (((1,), (1,)), ((), ())),
                                    preferred_element_type=jnp.float32)  # (ts, S_enc)
            s = s - jnp.max(s, axis=-1, keepdims=True)
            e = jnp.exp(s)
            attn = attn + e * pl.reciprocal(jnp.sum(e, axis=-1, keepdims=True),
                                            approx=True)
        attn = attn * (1.0 / num_heads)
        attn_bf = attn.astype(jnp.bfloat16)
        attn_sc[...] = attn_bf

        # p2 softmax denominator over the real vocab.  a_out = attn @ one_hot has values
        # in [0, 1], so exp is numerically safe without a running max; one pre-pass over
        # the vocab tiles (one_hot rebuilt from the resident src ids, no extra DMA).
        lane = jax.lax.broadcasted_iota(jnp.int32, (1, v_tile), 1)
        z = jnp.zeros((dec.shape[0], 1), jnp.float32)
        for t in range(num_v_tiles):
            col = lane + t * v_tile
            one_hot_t = (col == src).astype(jnp.bfloat16)                # (S_enc, v_tile)
            a_t = jnp.dot(attn_bf, one_hot_t, preferred_element_type=jnp.float32)
            e_t = jnp.exp(a_t)
            if t == num_v_tiles - 1 and v_pad != vocab:                  # static mask skip
                e_t = jnp.where(col < vocab, e_t, 0.0)
            z = z + jnp.sum(e_t, axis=-1, keepdims=True)
        zinv_sc[...] = 1.0 / z                                           # exact final norm

    # ---- per vocab-tile epilogue: copy distribution + gated blend --------------------
    src = src_ref[0]
    lane = jax.lax.broadcasted_iota(jnp.int32, (1, v_tile), 1) + v_idx * v_tile
    one_hot = (lane == src).astype(jnp.bfloat16)                         # (S_enc, v_tile)
    a_out = jnp.dot(attn_sc[...], one_hot, preferred_element_type=jnp.float32)
    p2 = jnp.exp(a_out) * zinv_sc[...]                                   # (ts, v_tile)
    p1 = p1_ref[0]
    w = gate_sc[...]
    out_ref[0] = p1 + w * (p2 - p1)


def _pick_sdec_tile(s_dec):
    if s_dec <= 128:
        return s_dec
    for t in (256, 128, 64, 32, 16, 8):
        if s_dec % t == 0:
            return t
    return s_dec


def _pick_vocab_tile(v_pad, cap=2048):
    if v_pad <= cap:
        return v_pad
    for t in range(cap, 127, -128):
        if v_pad % t == 0:
            return t
    return 128


def _nbytes(shape, dtype):
    n = 1
    for d in shape:
        n *= int(d)
    return n * jnp.dtype(dtype).itemsize


def copy_decoder(src_ids, dec_output, enc_output, p1, params, *, num_heads):
    (wq_fc, bq_fc, wq_at, bq_at, wk_at, bk_at, ww, bw) = params
    B, s_dec, d_model = dec_output.shape
    s_enc = enc_output.shape[1]
    vocab = p1.shape[-1]
    d_k = d_model // num_heads
    v_pad = ((vocab + 127) // 128) * 128

    ts = _pick_sdec_tile(s_dec)
    tv = _pick_vocab_tile(v_pad)
    num_v_tiles = v_pad // tv

    # ---- one-time host-side weight prep ---------------------------------------------
    inv_sqrt_dk = 1.0 / math.sqrt(d_k)
    wq_fused = (wq_fc @ wq_at) * inv_sqrt_dk                  # fcQ . Wq, score scale folded
    bq_fused = (bq_fc @ wq_at + bq_at) * inv_sqrt_dk
    # Gate weight/bias appended as one extra output column of the flat Q projection.
    wqg = jnp.concatenate([wq_fused, ww], axis=1).astype(jnp.bfloat16)        # (D, D+1)
    bqg = jnp.concatenate([bq_fused, bw.reshape(1, 1)], axis=1).astype(jnp.float32)
    wk_bf = wk_at.astype(jnp.bfloat16)                                        # (D, D)
    bk_f = bk_at.reshape(1, d_model).astype(jnp.float32)

    # bf16 activation streams (half the dec/enc DMA bytes, no in-kernel casts).
    dec_bf = dec_output.astype(jnp.bfloat16)
    enc_bf = enc_output.astype(jnp.bfloat16)
    src3 = src_ids.reshape(B, s_enc, 1).astype(jnp.int32)
    if v_pad != vocab:                                        # lane-dense vocab axis
        p1_in = jnp.pad(p1, ((0, 0), (0, 0), (0, v_pad - vocab)))
    else:
        p1_in = p1
    p1_in = p1_in.astype(jnp.float32)

    kernel = functools.partial(_copy_decoder_kernel, num_heads=num_heads, d_k=d_k,
                               vocab=vocab, v_tile=tv, num_v_tiles=num_v_tiles)

    # VMEM budget sized from actual tile footprint (double-buffered blocks + scratch).
    blk_bytes = (_nbytes((1, s_enc, 1), jnp.int32)
                 + _nbytes((1, ts, d_model), jnp.bfloat16)
                 + _nbytes((1, s_enc, d_model), jnp.bfloat16)
                 + 2 * _nbytes((1, ts, tv), jnp.float32)
                 + _nbytes(wqg.shape, jnp.bfloat16) + _nbytes(bqg.shape, jnp.float32)
                 + _nbytes(wk_bf.shape, jnp.bfloat16) + _nbytes(bk_f.shape, jnp.float32))
    scratch_bytes = _nbytes((ts, s_enc), jnp.bfloat16) + 2 * _nbytes((ts, 1), jnp.float32)
    vmem_limit = int(min(max(2 * blk_bytes + scratch_bytes + (4 << 20), 16 << 20), 64 << 20))

    out_pad = pl.pallas_call(
        kernel,
        out_shape=jax.ShapeDtypeStruct((B, s_dec, v_pad), jnp.float32),
        grid=(B, s_dec // ts, num_v_tiles),
        in_specs=[
            pl.BlockSpec((1, s_enc, 1), lambda b, s, v: (b, 0, 0)),         # src ids
            pl.BlockSpec((1, ts, d_model), lambda b, s, v: (b, s, 0)),      # dec (bf16)
            pl.BlockSpec((1, s_enc, d_model), lambda b, s, v: (b, 0, 0)),   # enc (bf16)
            pl.BlockSpec((1, ts, tv), lambda b, s, v: (b, s, v)),           # p1 (padded)
            pl.BlockSpec(wqg.shape, lambda b, s, v: (0, 0)),                # [Wq_fused|ww]
            pl.BlockSpec(bqg.shape, lambda b, s, v: (0, 0)),                # [bq_fused|bw]
            pl.BlockSpec(wk_bf.shape, lambda b, s, v: (0, 0)),              # Wk
            pl.BlockSpec(bk_f.shape, lambda b, s, v: (0, 0)),               # bk
        ],
        out_specs=pl.BlockSpec((1, ts, tv), lambda b, s, v: (b, s, v)),
        scratch_shapes=[
            pltpu.VMEM((ts, s_enc), jnp.bfloat16),    # head-averaged attention probs
            pltpu.VMEM((ts, 1), jnp.float32),         # sigmoid gate w
            pltpu.VMEM((ts, 1), jnp.float32),         # 1 / p2 softmax denominator
        ],
        input_output_aliases={3: 0},                  # out fully overwrites padded p1
        compiler_params=pltpu.CompilerParams(
            dimension_semantics=("parallel", "parallel", "arbitrary"),
            vmem_limit_bytes=vmem_limit),
    )(src3, dec_bf, enc_bf, p1_in, wqg, bqg, wk_bf, bk_f)

    # TODO(synk): return the vocab-padded array directly if the consumer accepts it; the
    # slice materializes one extra (B, S_dec, V) copy in HBM on this memory-bound head.
    return out_pad[..., :vocab]


def copy_decoder_ref(src_ids, dec_output, enc_output, p1, params, *, num_heads):
    """Pure-JAX f32 reference (un-fused, matches the PyTorch forward semantics)."""
    (wq_fc, bq_fc, wq_at, bq_at, wk_at, bk_at, ww, bw) = params
    B, s_dec, d_model = dec_output.shape
    s_enc = enc_output.shape[1]
    vocab = p1.shape[-1]
    d_k = d_model // num_heads

    one_hot = jax.nn.one_hot(src_ids, vocab, dtype=jnp.float32)           # (B, S_enc, V)
    copy_q = dec_output @ wq_fc + bq_fc
    q = copy_q @ wq_at + bq_at
    k = enc_output @ wk_at + bk_at
    qh = q.reshape(B, s_dec, num_heads, d_k).transpose(0, 2, 1, 3)
    kh = k.reshape(B, s_enc, num_heads, d_k).transpose(0, 2, 1, 3)
    scores = jnp.einsum("bhqd,bhkd->bhqk", qh, kh) / math.sqrt(d_k)
    attn = jax.nn.softmax(scores, axis=-1).mean(axis=1)                   # (B, S_dec, S_enc)
    a_out = attn @ one_hot
    p2 = jax.nn.softmax(a_out, axis=-1)
    w = jax.nn.sigmoid(dec_output @ ww + bw[0, 0])
    return p2 * w + (1.0 - w) * p1


def _xavier_uniform(key, shape):
    fan_in, fan_out = shape
    bound = math.sqrt(6.0 / (fan_in + fan_out))
    return jax.random.uniform(key, shape, jnp.float32, -bound, bound)


if __name__ == "__main__":
    B, s_dec, s_enc = 2, 8, 8
    d_model, num_heads = 32, 4
    src_vocab_size = 16

    key = jax.random.PRNGKey(0)
    k1, k2, k3, k4, k5, k6, k7, k8 = jax.random.split(key, 8)

    dec_output = jax.random.normal(k1, (B, s_dec, d_model), jnp.float32)
    enc_output = jax.random.normal(k2, (B, s_enc, d_model), jnp.float32)
    src_ids = jax.random.randint(k3, (B, s_enc), 0, src_vocab_size, jnp.int32)
    p1 = jax.nn.softmax(jax.random.normal(k4, (B, s_dec, src_vocab_size), jnp.float32), axis=-1)

    params = (
        _xavier_uniform(k5, (d_model, d_model)), jnp.zeros((1, d_model), jnp.float32),  # fcQ
        _xavier_uniform(k6, (d_model, d_model)), jnp.zeros((1, d_model), jnp.float32),  # attn Wq
        _xavier_uniform(k7, (d_model, d_model)), jnp.zeros((1, d_model), jnp.float32),  # attn Wk
        _xavier_uniform(k8, (d_model, 1)), jnp.zeros((1, 1), jnp.float32),              # fcw
    )

    out = copy_decoder(src_ids, dec_output, enc_output, p1, params, num_heads=num_heads)
    out = jax.block_until_ready(out)

    ref = copy_decoder_ref(src_ids, dec_output, enc_output, p1, params, num_heads=num_heads)
    assert out.shape == (B, s_dec, src_vocab_size)
    # bf16 MXU operands + approx EUP reciprocal (attn softmax) vs. the f32 reference.
    assert jnp.allclose(out, ref, atol=2e-2, rtol=2e-2), "mismatch vs JAX reference"

    print("KERNEL_OK")
</pallas_src>

<mosaic_0001>
module attributes {stable_mosaic.version = 11 : i64} {
  func.func @_copy_decoder_kernel(%arg0: i32, %arg1: i32, %arg2: i32, %arg3: memref<1x8x1xi32, #tpu.memory_space<vmem>>, %arg4: memref<1x8x32xbf16, #tpu.memory_space<vmem>>, %arg5: memref<1x8x32xbf16, #tpu.memory_space<vmem>>, %arg6: memref<1x8x128xf32, #tpu.memory_space<vmem>>, %arg7: memref<32x33xbf16, #tpu.memory_space<vmem>>, %arg8: memref<1x33xf32, #tpu.memory_space<vmem>>, %arg9: memref<32x32xbf16, #tpu.memory_space<vmem>>, %arg10: memref<1x32xf32, #tpu.memory_space<vmem>>, %arg11: memref<1x8x128xf32, #tpu.memory_space<vmem>>, %arg12: memref<8x8xbf16, #tpu.memory_space<vmem>>, %arg13: memref<8x1xf32, #tpu.memory_space<vmem>>, %arg14: memref<8x1xf32, #tpu.memory_space<vmem>>) attributes {dimension_semantics = [#tpu.dimension_semantics<parallel>, #tpu.dimension_semantics<parallel>, #tpu.dimension_semantics<arbitrary>], iteration_bounds = array<i64: 2, 1, 1>, scalar_prefetch = 0 : i64, scratch_operands = 3 : i64, tpu.core_type = #tpu.core_type<tc>, window_params = [{transform_indices = @transform_0, window_bounds = array<i64: 1, 8, 1>}, {transform_indices = @transform_1, window_bounds = array<i64: 1, 8, 32>}, {transform_indices = @transform_2, window_bounds = array<i64: 1, 8, 32>}, {transform_indices = @transform_3, window_bounds = array<i64: 1, 8, 128>}, {pipeline_mode = #tpu.pipeline_mode<synchronous>, transform_indices = @transform_4, window_bounds = array<i64: 32, 33>}, {pipeline_mode = #tpu.pipeline_mode<synchronous>, transform_indices = @transform_5, window_bounds = array<i64: 1, 33>}, {pipeline_mode = #tpu.pipeline_mode<synchronous>, transform_indices = @transform_6, window_bounds = array<i64: 32, 32>}, {pipeline_mode = #tpu.pipeline_mode<synchronous>, transform_indices = @transform_7, window_bounds = array<i64: 1, 32>}, {transform_indices = @transform_8, window_bounds = array<i64: 1, 8, 128>}]} {
    %c0_i32 = arith.constant 0 : i32
    %0 = arith.cmpi eq, %arg2, %c0_i32 : i32
    %1 = arith.extui %0 : i1 to i32
    %c0_i32_0 = arith.constant 0 : i32
    %2 = arith.cmpi ne, %1, %c0_i32_0 : i32
    scf.if %2 {
      %c0_15 = arith.constant 0 : index
      %c0_16 = arith.constant 0 : index
      %c0_17 = arith.constant 0 : index
      %31 = vector.load %arg4[%c0_15, %c0_16, %c0_17] : memref<1x8x32xbf16, #tpu.memory_space<vmem>>, vector<1x8x32xbf16>
      %32 = vector.shape_cast %31 : vector<1x8x32xbf16> to vector<8x32xbf16>
      %c0_18 = arith.constant 0 : index
      %c0_19 = arith.constant 0 : index
      %c0_20 = arith.constant 0 : index
      %33 = vector.load %arg5[%c0_18, %c0_19, %c0_20] : memref<1x8x32xbf16, #tpu.memory_space<vmem>>, vector<1x8x32xbf16>
      %34 = vector.shape_cast %33 : vector<1x8x32xbf16> to vector<8x32xbf16>
      %c0_21 = arith.constant 0 : index
      %c0_22 = arith.constant 0 : index
      %c0_23 = arith.constant 0 : index
      %35 = vector.load %arg3[%c0_21, %c0_22, %c0_23] : memref<1x8x1xi32, #tpu.memory_space<vmem>>, vector<1x8x1xi32>
      %36 = vector.shape_cast %35 : vector<1x8x1xi32> to vector<8x1xi32>
      %c0_24 = arith.constant 0 : index
      %c0_25 = arith.constant 0 : index
      %37 = vector.load %arg7[%c0_24, %c0_25] : memref<32x33xbf16, #tpu.memory_space<vmem>>, vector<32x33xbf16>
      %cst_26 = arith.constant dense<0.000000e+00> : vector<8x33xf32>
      %38 = tpu.matmul %32, %37, %cst_26 {dimension_numbers = #tpu.dot_dimension_numbers<[1], [0], [0], [1], [0, 0, 1, 1], [], []>} : vector<8x32xbf16>, vector<32x33xbf16>, vector<8x33xf32> -> vector<8x33xf32>
      %c0_27 = arith.constant 0 : index
      %c0_28 = arith.constant 0 : index
      %39 = vector.load %arg8[%c0_27, %c0_28] : memref<1x33xf32, #tpu.memory_space<vmem>>, vector<1x33xf32>
      %40 = vector.broadcast %39 : vector<1x33xf32> to vector<8x33xf32>
      %41 = arith.addf %38, %40 : vector<8x33xf32>
      %c0_29 = arith.constant 0 : index
      %c0_30 = arith.constant 0 : index
      %42 = vector.load %arg9[%c0_29, %c0_30] : memref<32x32xbf16, #tpu.memory_space<vmem>>, vector<32x32xbf16>
      %cst_31 = arith.constant dense<0.000000e+00> : vector<8x32xf32>
      %43 = tpu.matmul %34, %42, %cst_31 {dimension_numbers = #tpu.dot_dimension_numbers<[1], [0], [0], [1], [0, 0, 1, 1], [], []>} : vector<8x32xbf16>, vector<32x32xbf16>, vector<8x32xf32> -> vector<8x32xf32>
      %c0_32 = arith.constant 0 : index
      %c0_33 = arith.constant 0 : index
      %44 = vector.load %arg10[%c0_32, %c0_33] : memref<1x32xf32, #tpu.memory_space<vmem>>, vector<1x32xf32>
      %45 = vector.broadcast %44 : vector<1x32xf32> to vector<8x32xf32>
      %46 = arith.addf %43, %45 : vector<8x32xf32>
      %47 = vector.extract_strided_slice %41 {offsets = [0, 32], sizes = [8, 1], strides = [1, 1]} : vector<8x33xf32> to vector<8x1xf32>
      %48 = arith.negf %47 : vector<8x1xf32>
      %49 = math.exp %48 : vector<8x1xf32>
      %cst_34 = arith.constant 1.000000e+00 : f32
      %50 = vector.broadcast %cst_34 : f32 to vector<8x1xf32>
      %51 = arith.addf %50, %49 : vector<8x1xf32>
      %52 = arith.divf %50, %51 : vector<8x1xf32>
      %c0_35 = arith.constant 0 : index
      %c0_36 = arith.constant 0 : index
      %53 = vector.load %arg13[%c0_35, %c0_36] : memref<8x1xf32, #tpu.memory_space<vmem>>, vector<8x1xf32>
      tpu.vector_store %arg13[%c0_35, %c0_36], %52 {strides = array<i32>} : memref<8x1xf32, #tpu.memory_space<vmem>>, vector<8x1xf32>,
      %54 = vector.extract_strided_slice %41 {offsets = [0, 0], sizes = [8, 32], strides = [1, 1]} : vector<8x33xf32> to vector<8x32xf32>
      %55 = arith.truncf %54 : vector<8x32xf32> to vector<8x32xbf16>
      %56 = arith.truncf %46 : vector<8x32xf32> to vector<8x32xbf16>
      %cst_37 = arith.constant 0.000000e+00 : f32
      %57 = vector.broadcast %cst_37 : f32 to vector<8x8xf32>
      %58 = vector.extract_strided_slice %55 {offsets = [0, 0], sizes = [8, 8], strides = [1, 1]} : vector<8x32xbf16> to vector<8x8xbf16>
      %59 = vector.extract_strided_slice %56 {offsets = [0, 0], sizes = [8, 8], strides = [1, 1]} : vector<8x32xbf16> to vector<8x8xbf16>
      %cst_38 = arith.constant dense<0.000000e+00> : vector<8x8xf32>
      %60 = tpu.matmul %58, %59, %cst_38 {dimension_numbers = #tpu.dot_dimension_numbers<[1], [1], [0], [0], [0, 0, 1, 0], [], []>} : vector<8x8xbf16>, vector<8x8xbf16>, vector<8x8xf32> -> vector<8x8xf32>
      %cst_39 = arith.constant dense<0xFF800000> : vector<8xf32>
      %61 = vector.multi_reduction <maximumf>, %60, %cst_39 [1] : vector<8x8xf32> to vector<8xf32>
      %62 = vector.shape_cast %61 : vector<8xf32> to vector<8x1xf32>
      %63 = vector.broadcast %62 : vector<8x1xf32> to vector<8x8xf32>
      %64 = arith.subf %60, %63 : vector<8x8xf32>
      %65 = math.exp %64 : vector<8x8xf32>
      %cst_40 = arith.constant dense<0.000000e+00> : vector<8xf32>
      %66 = vector.multi_reduction <add>, %65, %cst_40 [1] : vector<8x8xf32> to vector<8xf32>
      %67 = vector.shape_cast %66 : vector<8xf32> to vector<8x1xf32>
      %68 = tpu.reciprocal %67 {approx = true} : vector<8x1xf32> -> vector<8x1xf32>
      %69 = vector.broadcast %68 : vector<8x1xf32> to vector<8x8xf32>
      %70 = arith.mulf %65, %69 : vector<8x8xf32>
      %71 = arith.addf %57, %70 : vector<8x8xf32>
      %72 = vector.extract_strided_slice %55 {offsets = [0, 8], sizes = [8, 8], strides = [1, 1]} : vector<8x32xbf16> to vector<8x8xbf16>
      %73 = vector.extract_strided_slice %56 {offsets = [0, 8], sizes = [8, 8], strides = [1, 1]} : vector<8x32xbf16> to vector<8x8xbf16>
      %cst_41 = arith.constant dense<0.000000e+00> : vector<8x8xf32>
      %74 = tpu.matmul %72, %73, %cst_41 {dimension_numbers = #tpu.dot_dimension_numbers<[1], [1], [0], [0], [0, 0, 1, 0], [], []>} : vector<8x8xbf16>, vector<8x8xbf16>, vector<8x8xf32> -> vector<8x8xf32>
      %cst_42 = arith.constant dense<0xFF800000> : vector<8xf32>
      %75 = vector.multi_reduction <maximumf>, %74, %cst_42 [1] : vector<8x8xf32> to vector<8xf32>
      %76 = vector.shape_cast %75 : vector<8xf32> to vector<8x1xf32>
      %77 = vector.broadcast %76 : vector<8x1xf32> to vector<8x8xf32>
      %78 = arith.subf %74, %77 : vector<8x8xf32>
      %79 = math.exp %78 : vector<8x8xf32>
      %cst_43 = arith.constant dense<0.000000e+00> : vector<8xf32>
      %80 = vector.multi_reduction <add>, %79, %cst_43 [1] : vector<8x8xf32> to vector<8xf32>
      %81 = vector.shape_cast %80 : vector<8xf32> to vector<8x1xf32>
      %82 = tpu.reciprocal %81 {approx = true} : vector<8x1xf32> -> vector<8x1xf32>
      %83 = vector.broadcast %82 : vector<8x1xf32> to vector<8x8xf32>
      %84 = arith.mulf %79, %83 : vector<8x8xf32>
      %85 = arith.addf %71, %84 : vector<8x8xf32>
      %86 = vector.extract_strided_slice %55 {offsets = [0, 16], sizes = [8, 8], strides = [1, 1]} : vector<8x32xbf16> to vector<8x8xbf16>
      %87 = vector.extract_strided_slice %56 {offsets = [0, 16], sizes = [8, 8], strides = [1, 1]} : vector<8x32xbf16> to vector<8x8xbf16>
      %cst_44 = arith.constant dense<0.000000e+00> : vector<8x8xf32>
      %88 = tpu.matmul %86, %87, %cst_44 {dimension_numbers = #tpu.dot_dimension_numbers<[1], [1], [0], [0], [0, 0, 1, 0], [], []>} : vector<8x8xbf16>, vector<8x8xbf16>, vector<8x8xf32> -> vector<8x8xf32>
      %cst_45 = arith.constant dense<0xFF800000> : vector<8xf32>
      %89 = vector.multi_reduction <maximumf>, %88, %cst_45 [1] : vector<8x8xf32> to vector<8xf32>
      %90 = vector.shape_cast %89 : vector<8xf32> to vector<8x1xf32>
      %91 = vector.broadcast %90 : vector<8x1xf32> to vector<8x8xf32>
      %92 = arith.subf %88, %91 : vector<8x8xf32>
      %93 = math.exp %92 : vector<8x8xf32>
      %cst_46 = arith.constant dense<0.000000e+00> : vector<8xf32>
      %94 = vector.multi_reduction <add>, %93, %cst_46 [1] : vector<8x8xf32> to vector<8xf32>
      %95 = vector.shape_cast %94 : vector<8xf32> to vector<8x1xf32>
      %96 = tpu.reciprocal %95 {approx = true} : vector<8x1xf32> -> vector<8x1xf32>
      %97 = vector.broadcast %96 : vector<8x1xf32> to vector<8x8xf32>
      %98 = arith.mulf %93, %97 : vector<8x8xf32>
      %99 = arith.addf %85, %98 : vector<8x8xf32>
      %100 = vector.extract_strided_slice %55 {offsets = [0, 24], sizes = [8, 8], strides = [1, 1]} : vector<8x32xbf16> to vector<8x8xbf16>
      %101 = vector.extract_strided_slice %56 {offsets = [0, 24], sizes = [8, 8], strides = [1, 1]} : vector<8x32xbf16> to vector<8x8xbf16>
      %cst_47 = arith.constant dense<0.000000e+00> : vector<8x8xf32>
      %102 = tpu.matmul %100, %101, %cst_47 {dimension_numbers = #tpu.dot_dimension_numbers<[1], [1], [0], [0], [0, 0, 1, 0], [], []>} : vector<8x8xbf16>, vector<8x8xbf16>, vector<8x8xf32> -> vector<8x8xf32>
      %cst_48 = arith.constant dense<0xFF800000> : vector<8xf32>
      %103 = vector.multi_reduction <maximumf>, %102, %cst_48 [1] : vector<8x8xf32> to vector<8xf32>
      %104 = vector.shape_cast %103 : vector<8xf32> to vector<8x1xf32>
      %105 = vector.broadcast %104 : vector<8x1xf32> to vector<8x8xf32>
      %106 = arith.subf %102, %105 : vector<8x8xf32>
      %107 = math.exp %106 : vector<8x8xf32>
      %cst_49 = arith.constant dense<0.000000e+00> : vector<8xf32>
      %108 = vector.multi_reduction <add>, %107, %cst_49 [1] : vector<8x8xf32> to vector<8xf32>
      %109 = vector.shape_cast %108 : vector<8xf32> to vector<8x1xf32>
      %110 = tpu.reciprocal %109 {approx = true} : vector<8x1xf32> -> vector<8x1xf32>
      %111 = vector.broadcast %110 : vector<8x1xf32> to vector<8x8xf32>
      %112 = arith.mulf %107, %111 : vector<8x8xf32>
      %113 = arith.addf %99, %112 : vector<8x8xf32>
      %cst_50 = arith.constant 2.500000e-01 : f32
      %114 = vector.broadcast %cst_50 : f32 to vector<8x8xf32>
      %115 = arith.mulf %113, %114 : vector<8x8xf32>
      %116 = arith.truncf %115 : vector<8x8xf32> to vector<8x8xbf16>
      %c0_51 = arith.constant 0 : index
      %c0_52 = arith.constant 0 : index
      %117 = vector.load %arg12[%c0_51, %c0_52] : memref<8x8xbf16, #tpu.memory_space<vmem>>, vector<8x8xbf16>
      tpu.vector_store %arg12[%c0_51, %c0_52], %116 {strides = array<i32>} : memref<8x8xbf16, #tpu.memory_space<vmem>>, vector<8x8xbf16>,
      %118 = tpu.iota {dimensions = array<i32: 1>} : vector<1x128xi32>
      %cst_53 = arith.constant 0.000000e+00 : f32
      %119 = vector.broadcast %cst_53 : f32 to vector<8x1xf32>
      %c0_i32_54 = arith.constant 0 : i32
      %120 = vector.broadcast %c0_i32_54 : i32 to vector<1x128xi32>
      %121 = arith.addi %118, %120 : vector<1x128xi32>
      %122 = vector.broadcast %121 : vector<1x128xi32> to vector<8x128xi32>
      %123 = vector.broadcast %36 : vector<8x1xi32> to vector<8x128xi32>
      %124 = arith.cmpi eq, %122, %123 : vector<8x128xi32>
      %125 = arith.extui %124 : vector<8x128xi1> to vector<8x128xi32>
      %126 = arith.sitofp %125 : vector<8x128xi32> to vector<8x128xf32>
      %127 = arith.truncf %126 : vector<8x128xf32> to vector<8x128xbf16>
      %cst_55 = arith.constant dense<0.000000e+00> : vector<8x128xf32>
      %128 = tpu.matmul %116, %127, %cst_55 {dimension_numbers = #tpu.dot_dimension_numbers<[1], [0], [0], [1], [0, 0, 1, 1], [], []>} : vector<8x8xbf16>, vector<8x128xbf16>, vector<8x128xf32> -> vector<8x128xf32>
      %129 = math.exp %128 : vector<8x128xf32>
      %c16_i32 = arith.constant 16 : i32
      %130 = vector.broadcast %c16_i32 : i32 to vector<1x128xi32>
      %131 = arith.cmpi slt, %121, %130 : vector<1x128xi32>
      %cst_56 = arith.constant 0.000000e+00 : f32
      %132 = vector.shape_cast %131 : vector<1x128xi1> to vector<1x128xi1>
      %133 = vector.broadcast %132 : vector<1x128xi1> to vector<8x128xi1>
      %134 = vector.broadcast %cst_56 : f32 to vector<8x128xf32>
      %135 = arith.select %133, %129, %134 : vector<8x128xi1>, vector<8x128xf32>
      %cst_57 = arith.constant dense<0.000000e+00> : vector<8xf32>
      %136 = vector.multi_reduction <add>, %135, %cst_57 [1] : vector<8x128xf32> to vector<8xf32>
      %137 = vector.shape_cast %136 : vector<8xf32> to vector<8x1xf32>
      %138 = arith.addf %119, %137 : vector<8x1xf32>
      %cst_58 = arith.constant 1.000000e+00 : f32
      %139 = vector.broadcast %cst_58 : f32 to vector<8x1xf32>
      %140 = arith.divf %139, %138 : vector<8x1xf32>
      %c0_59 = arith.constant 0 : index
      %c0_60 = arith.constant 0 : index
      %141 = vector.load %arg14[%c0_59, %c0_60] : memref<8x1xf32, #tpu.memory_space<vmem>>, vector<8x1xf32>
      tpu.vector_store %arg14[%c0_59, %c0_60], %140 {strides = array<i32>} : memref<8x1xf32, #tpu.memory_space<vmem>>, vector<8x1xf32>,
    } else {
    }
    %c0 = arith.constant 0 : index
    %c0_1 = arith.constant 0 : index
    %c0_2 = arith.constant 0 : index
    %3 = vector.load %arg3[%c0, %c0_1, %c0_2] : memref<1x8x1xi32, #tpu.memory_space<vmem>>, vector<1x8x1xi32>
    %4 = vector.shape_cast %3 : vector<1x8x1xi32> to vector<8x1xi32>
    %5 = tpu.iota {dimensions = array<i32: 1>} : vector<1x128xi32>
    %c128_i32 = arith.constant 128 : i32
    %6 = arith.muli %arg2, %c128_i32 : i32
    %7 = vector.broadcast %6 : i32 to vector<1x128xi32>
    %8 = arith.addi %5, %7 : vector<1x128xi32>
    %9 = vector.broadcast %8 : vector<1x128xi32> to vector<8x128xi32>
    %10 = vector.broadcast %4 : vector<8x1xi32> to vector<8x128xi32>
    %11 = arith.cmpi eq, %9, %10 : vector<8x128xi32>
    %12 = arith.extui %11 : vector<8x128xi1> to vector<8x128xi32>
    %13 = arith.sitofp %12 : vector<8x128xi32> to vector<8x128xf32>
    %14 = arith.truncf %13 : vector<8x128xf32> to vector<8x128xbf16>
    %c0_3 = arith.constant 0 : index
    %c0_4 = arith.constant 0 : index
    %15 = vector.load %arg12[%c0_3, %c0_4] : memref<8x8xbf16, #tpu.memory_space<vmem>>, vector<8x8xbf16>
    %cst = arith.constant dense<0.000000e+00> : vector<8x128xf32>
    %16 = tpu.matmul %15, %14, %cst {dimension_numbers = #tpu.dot_dimension_numbers<[1], [0], [0], [1], [0, 0, 1, 1], [], []>} : vector<8x8xbf16>, vector<8x128xbf16>, vector<8x128xf32> -> vector<8x128xf32>
    %17 = math.exp %16 : vector<8x128xf32>
    %c0_5 = arith.constant 0 : index
    %c0_6 = arith.constant 0 : index
    %18 = vector.load %arg14[%c0_5, %c0_6] : memref<8x1xf32, #tpu.memory_space<vmem>>, vector<8x1xf32>
    %19 = vector.broadcast %18 : vector<8x1xf32> to vector<8x128xf32>
    %20 = arith.mulf %17, %19 : vector<8x128xf32>
    %c0_7 = arith.constant 0 : index
    %c0_8 = arith.constant 0 : index
    %c0_9 = arith.constant 0 : index
    %21 = vector.load %arg6[%c0_7, %c0_8, %c0_9] : memref<1x8x128xf32, #tpu.memory_space<vmem>>, vector<1x8x128xf32>
    %22 = vector.shape_cast %21 : vector<1x8x128xf32> to vector<8x128xf32>
    %c0_10 = arith.constant 0 : index
    %c0_11 = arith.constant 0 : index
    %23 = vector.load %arg13[%c0_10, %c0_11] : memref<8x1xf32, #tpu.memory_space<vmem>>, vector<8x1xf32>
    %24 = arith.subf %20, %22 : vector<8x128xf32>
    %25 = vector.broadcast %23 : vector<8x1xf32> to vector<8x128xf32>
    %26 = arith.mulf %25, %24 : vector<8x128xf32>
    %27 = arith.addf %22, %26 : vector<8x128xf32>
    %c0_12 = arith.constant 0 : index
    %c0_13 = arith.constant 0 : index
    %c0_14 = arith.constant 0 : index
    %28 = vector.load %arg11[%c0_12, %c0_13, %c0_14] : memref<1x8x128xf32, #tpu.memory_space<vmem>>, vector<1x8x128xf32>
    %29 = vector.shape_cast %28 : vector<1x8x128xf32> to vector<8x128xf32>
    %30 = vector.shape_cast %27 : vector<8x128xf32> to vector<1x8x128xf32>
    tpu.vector_store %arg11[%c0_12, %c0_13, %c0_14], %30 {strides = array<i32>} : memref<1x8x128xf32, #tpu.memory_space<vmem>>, vector<1x8x128xf32>,
    return
  }
  func.func @transform_0(%arg0: i32, %arg1: i32, %arg2: i32) -> (i32, i32, i32) {
    %c0_i32 = arith.constant 0 : i32
    %c0_i32_0 = arith.constant 0 : i32
    %c0_i32_1 = arith.constant 0 : i32
    return %arg0, %c0_i32, %c0_i32_0 : i32, i32, i32
  }
  func.func @transform_1(%arg0: i32, %arg1: i32, %arg2: i32) -> (i32, i32, i32) {
    %c0_i32 = arith.constant 0 : i32
    %c0_i32_0 = arith.constant 0 : i32
    return %arg0, %arg1, %c0_i32 : i32, i32, i32
  }
  func.func @transform_2(%arg0: i32, %arg1: i32, %arg2: i32) -> (i32, i32, i32) {
    %c0_i32 = arith.constant 0 : i32
    %c0_i32_0 = arith.constant 0 : i32
    %c0_i32_1 = arith.constant 0 : i32
    return %arg0, %c0_i32, %c0_i32_0 : i32, i32, i32
  }
  func.func @transform_3(%arg0: i32, %arg1: i32, %arg2: i32) -> (i32, i32, i32) {
    %c0_i32 = arith.constant 0 : i32
    return %arg0, %arg1, %arg2 : i32, i32, i32
  }
  func.func @transform_4(%arg0: i32, %arg1: i32, %arg2: i32) -> (i32, i32) {
    %c0_i32 = arith.constant 0 : i32
    %c0_i32_0 = arith.constant 0 : i32
    %c0_i32_1 = arith.constant 0 : i32
    return %c0_i32, %c0_i32_0 : i32, i32
  }
  func.func @transform_5(%arg0: i32, %arg1: i32, %arg2: i32) -> (i32, i32) {
    %c0_i32 = arith.constant 0 : i32
    %c0_i32_0 = arith.constant 0 : i32
    %c0_i32_1 = arith.constant 0 : i32
    return %c0_i32, %c0_i32_0 : i32, i32
  }
  func.func @transform_6(%arg0: i32, %arg1: i32, %arg2: i32) -> (i32, i32) {
    %c0_i32 = arith.constant 0 : i32
    %c0_i32_0 = arith.constant 0 : i32
    %c0_i32_1 = arith.constant 0 : i32
    return %c0_i32, %c0_i32_0 : i32, i32
  }
  func.func @transform_7(%arg0: i32, %arg1: i32, %arg2: i32) -> (i32, i32) {
    %c0_i32 = arith.constant 0 : i32
    %c0_i32_0 = arith.constant 0 : i32
    %c0_i32_1 = arith.constant 0 : i32
    return %c0_i32, %c0_i32_0 : i32, i32
  }
  func.func @transform_8(%arg0: i32, %arg1: i32, %arg2: i32) -> (i32, i32, i32) {
    %c0_i32 = arith.constant 0 : i32
    return %arg0, %arg1, %arg2 : i32, i32, i32
  }
}

</mosaic_0001>

<bundles_post_ra>
// kernel: tpu_custom_call.1
= control target key start
LH: loop header
LB: loop body
LE: loop exit
PB: predicated region body
PF: predicated region fallthrough
CT: control target
= control target key end

     0   :  { %s1800_s0 = inlined_call_operand.vmem [shape: s32[2,8,1], index: 0, kind: input, shape index: {}]   ;;  %s1801_s1 = inlined_call_operand.vmem [shape: bf16[2,8,32], index: 1, kind: input, shape index: {}]   ;;  %s1802_s2 = inlined_call_operand.vmem [shape: bf16[2,8,32], index: 2, kind: input, shape index: {}]   ;;  %s1803_s3 = inlined_call_operand.hbm [shape: f32[2,8,128], index: 3, kind: input, shape index: {}, may-alias: {3,8}]   ;;  %s1804_s4 = inlined_call_operand.vmem [shape: bf16[32,33], index: 4, kind: input, shape index: {}]   ;;  %s1805_s5 = inlined_call_operand.vmem [shape: f32[1,33], index: 5, kind: input, shape index: {}]   ;;  %s1806_s6 = inlined_call_operand.vmem [shape: bf16[32,32], index: 6, kind: input, shape index: {}]   ;;  %s1807_s7 = inlined_call_operand.hbm [shape: f32[1,32], index: 7, kind: input, shape index: {}]   ;;  %s1808_s8 = inlined_call_operand.hbm [shape: f32[2,8,128], index: 8, kind: output, shape index: {}, may-alias: {3,8}]  }
   0x1   :  { %1813 = sst [smem:[#allocation17_spill]] %s1807_s7 }
   0x2   :  { %13 = vsyncpa [#allocation6], 0 }
   0x3   :  { %15 = vsyncpa [#allocation6 + $0x1], 0 }
   0x4   :  { %16 = vsyncpa [#allocation9], 0 }
   0x5   :  { %17 = vsyncpa [#allocation7], 0 }
   0x6   :  { %19 = vsyncpa [#allocation7 + $0x1], 0  ;;  %s1543_s27 = smov 0   ;;  %s1545_s28 = smov 0  }
   0x7   :  { %s1547_s29 = smov 0   ;;  %s1549_s30 = smov 0  }
   0x8   :  { %s1551_s9 = smov 0   ;;  %s1553_s10 = smov 0  }
   0x9 LB: > { %1814 = sst [smem:[#allocation14_spill]] %s1482_s9  ;;  %s1131_s11 = sadd.s32 4294967295, %s1486_s10   ;;  %s1486_s10 = sphi %s1553_s10, %s25_s10   ;;  %s1482_s9 = sphi %s1551_s9, %s1831_s9   ;;  %s1478_s30 = sphi %s1549_s30, %s1830_s30   ;;  %s1474_s29 = sphi %s1547_s29, %s1834_s29   ;;  %s1470_s28 = sphi %s1545_s28, %s1833_s28   ;;  %s1466_s27 = sphi %s1543_s27, %s1832_s27  }
   0xa   : > { %s1132_s12 = sadd.s32 4294967294, %s1486_s10   ;;  %p148_p0 = scmp.ne.s32.totalorder %s1470_s28, %s1466_s27 }
   0xb   : > { %p1577_p1 = scmp.eq.s32.totalorder %s1131_s11, 0  ;;  %p1581_p2 = scmp.eq.s32.totalorder %s1131_s11, 1 }
   0xc   : > { %p266_p3 = scmp.eq.s32.totalorder %s1132_s12, 1  ;;  %p1133_p5 = scmp.ge.s32.totalorder %s1486_s10, 1 }
   0xd   : > { %p1587_p4 = por %p1577_p1, %p148_p0  ;;  %p273_p7 = scmp.lt.s32.totalorder %s1486_s10, 3 }
   0xe   : > { %p1592_p6 = por %p266_p3, %p148_p0  ;;  %s1488_s18 = smov [#allocation8]  }
   0xf   : > { %s1817_s15 = scalar_select %p1587_p4, 1, 0 }
  0x10   : > { %s1818_s16 = scalar_select %p1592_p6, 1, 0 }
  0x11   : > { %p1597_p8 = pnand %p1133_p5, %p273_p7  ;;  %s295_s19 = sshll.u32 %s1488_s18, 4  ;;  %s296_s19 = int_to_ptr.vmem [resolvable:$true] %s295_s19 }
  0x12   : > { %1819 = sst [smem:[#allocation15_spill]] %s1818_s16  ;;  %s44_s21 = sadd.s32 1, %s1482_s9 }
  0x13   : > { %p1244_p10 = pneg %p1597_p8  ;;  %s135_s22 = sadd.s32 1, %s1474_s29 }
  0x14   : > { %p46_p12 = scmp.ge.s32.totalorder %s44_s21, 2  ;;  %s1359_s23 = scalar_lea.vmem %s296_s19, 16 }
  0x15   : > { %p1606_p11 = pnand %p1244_p10, %p1577_p1  ;;  %p1360_p0 = scmp.ne.s32.totalorder %s296_s19, %s1359_s23 }
  0x16   : > { %s1366_s24 = scalar_lea.vmem %s296_s19, 32  ;;  %p1367_p7 = scmp.lt.s32.totalorder %s296_s19, %s296_s19 }
  0x17   : > { %p1350_p13 = pneg %p1606_p11  ;;  %p1368_p9 = scmp.lt.s32.totalorder %s1366_s24, %s1359_s23 }
  0x19   : > { %p1362_p3 = pnand %p1360_p0, %p1350_p13  ;;  %p1369_p6 = por %p1368_p9, %p1367_p7 }
  0x1b   : > { %p1363_p5 = pneg %p1362_p3 }
  0x1d   : > { %p1370_p4 = pnand %p1369_p6, %p1363_p5 }
  0x1f   : > { %1373 = shalt.err (!%p1370_p4)
}
  0x20   : > { %s1822_s7 = sld [smem:[#allocation17_spill]]  ;;  %s1836_s21 = smov (%p46_p12, %s44_s21), 0 }
  0x21   : > { %1823 = sst [smem:[#allocation16_spill]] %s1836_s21  ;;  %p142_p6 = scmp.ne.s32.totalorder %s1474_s29, %s1470_s28 }
  0x22   : > { %p143_p4 = scmp.eq.s32.totalorder %s1486_s10, 0  ;;  %s128_s11 = ssub.s32 %s1482_s9, %s1836_s21 }
  0x23   : > { %p1257_p9 = scmp.lt.s32.totalorder %s1486_s10, 2  ;;  %p133_p10 = scmp.eq.s32.totalorder %s128_s11, 0 }
  0x24   : > { %p144_p13 = por %p143_p4, %p142_p6  ;;  %p1629_p0 = por %p1581_p2, %p142_p6 }
  0x25   : > { %s330_s18 = sand.u32 1, %s1474_s29   ;;  %s1137_s24 = sshll.u32 %s1482_s9, 7 }
  0x26   : > { %1247 = dma.hbm_to_vmem [thread:$0]  (!%p1606_p11), %s1822_s7, 16, %s296_s19, [#allocation9]  }
  0x27   : > { %s1635_s20 = scalar_select %p133_p10, %s1474_s29, %s135_s22  }
  0x28   : > { %s1136_s23 = sshll.u32 %s330_s18, 3  ;;  %s341_s26 = scalar_lea.hbm %s1803_s3, %s1137_s24 }
  0x29   : > { %s334_s7 = scalar_lea.vmem [#allocation5], %s1136_s23  ;;  %p1641_p11 = pnand %p1257_p9, %p144_p13 }
  0x2a   : > { %s343_s16 = sshll.u32 %s334_s7, 4  ;;  %s331_s14 = scalar_lea.sflag [#allocation6], %s330_s18  ;;  %s344_s16 = int_to_ptr.vmem [resolvable:$true] %s343_s16 }
  0x2b   : > { %p1376_p2 = pneg %p1641_p11  ;;  %s1387_s21 = scalar_lea.vmem %s344_s16, 128 }
  0x2c   : > { %p1388_p12 = scmp.ne.s32.totalorder %s344_s16, %s1387_s21  ;;  %s1489_s22 = smov [#allocation5]  }
  0x2d   : > { %s1392_s9 = sshll.u32 %s1489_s22, 4  ;;  %s1393_s9 = int_to_ptr.vmem [resolvable:$false] %s1392_s9 }
  0x2e   : > { %p1390_p3 = pnand %p1388_p12, %p1376_p2  ;;  %s1394_s19 = scalar_lea.vmem %s1393_s9, 256 }
  0x2f   : > { %p1395_p7 = scmp.lt.s32.totalorder %s344_s16, %s1393_s9  ;;  %p1396_p6 = scmp.lt.s32.totalorder %s1394_s19, %s1387_s21 }
  0x30   : > { %p1391_p5 = pneg %p1390_p3 }
  0x31   : > { %p1397_p4 = por %p1396_p6, %p1395_p7 }
  0x33   : > { %p1398_p10 = pnand %p1397_p4, %p1391_p5 }
  0x35   : > { %1401 = shalt.err (!%p1398_p10)
}
  0x36   : > { %1251 = dma.hbm_to_vmem [thread:$0]  (!%p1641_p11), %s341_s26, 128, %s344_s16, %s331_s14  }
  0x37   : > { %352 = sbr.rel (%p1597_p8) target bundleno = 1427 (0x593), region = 52  ;;  %s1652_s7 = sand.u32 (!%p1597_p8), 1, %s1470_s28  }
  0x38   : > { %s1139_s18 = sshll.u32 (!%p1597_p8), %s1652_s7, 3  ;;  %s355_s23 = scalar_lea.sflag (!%p1597_p8), [#allocation6], %s1652_s7 }
  0x39   : > { %s1658_s9 = scalar_lea.vmem (!%p1597_p8), [#allocation5], %s1139_s18  ;;  %p1826_p9 = scmp.ne.s32.totalorder (!%p1597_p8), %s1817_s15, 0 }
  0x3c   : > { %1453 = dma.done.wait (%p1826_p9), %s355_s23, 128  }
  0x3d   : > { %1455 = vsyncadd (%p1826_p9), %s355_s23, 4294967168 }
  0x3e   : > { %1457 = dma.done.wait (%p1577_p1), [#allocation9], 16  }
  0x3f   : > { %1459 = vsyncadd (%p1577_p1), [#allocation9], 4294967280  ;;  %p410_p8 = scmp.lt.s32.totalorder %s1478_s30, 1  ;;  %v1490_v0 = vmov 0.0   ;;  %vm1491_vm0 = vmmov 0   ;;  %v1318_v1 = vld [vmem:[%s1804_s4 + $0x8] sm:$0xff]  }
  0x40   : > { %1184 = vmatprep.subr.bf16.mxu0 %v1490_v0  ;;  %1192 = vmatprep.subr.bf16.mxu1 %v1490_v0  ;;  %v1319_v2 = vld [vmem:[%s1806_s6 + $0x8] sm:$0xff]   ;;  %v1320_v3 = vld [vmem:[%s1804_s4] sm:$0xff]   ;;  %vm456_vm1 = vcmask 261120   ;;  %vm580_vm2 = vcmask 64512   ;;  %s1493_s26 = smov 104   ;;  %s1494_s11 = smov 112  }
  0x41   : > { %1188 = vmatprep.mubr.msk.bf16.mxu0 %vm1491_vm0, %v1490_v0  ;;  %1196 = vmatprep.mubr.msk.bf16.mxu1 %vm1491_vm0, %v1490_v0  ;;  %s1676_s15 = scalar_select %p410_p8, %s1478_s30, 1  ;;  %v1321_v4 = vld [vmem:[%s1806_s6] sm:$0xff]   ;;  %v1495_v56 = vmov 0   ;;  %vm843_vm4 = vcmask 1043456   ;;  %vm576_vm6 = vcmask 7168   ;;  %vm829_vm7 = vcmask 60416  }
  0x42   : > { %1185 = vmatpush3.bf16.msra.mxu0 %v1318_v1  ;;  %1193 = vmatpush3.bf16.msra.mxu1 %v1319_v2  ;;  %v1145_v7 = vld [vmem:[%s1805_s5] ss:$0 sm:$0xff]  ;;  %v1149_v8 = vld [vmem:[#allocation8] ss:$0 sm:$0xff]  ;;  %s1496_s16 = smov 96   ;;  %s409_s13 = scalar_lea.vmem [#allocation10], %s1139_s18 }
  0x43   : > { %s1143_s17 = sshll.u32 %s1676_s15, 2  ;;  %1186 = vmatprep.subr.bf16.mxu0 %v1490_v0  ;;  %1194 = vmatprep.subr.bf16.mxu1 %v1490_v0  ;;  %s1142_s14 = sshll.u32 %s1676_s15, 3 }
  0x44   : > { %s420_s23 = scalar_lea.vmem %s1801_s1, %s1143_s17  ;;  %s424_s21 = scalar_lea.vmem %s1802_s2, %s1143_s17  ;;  %1317 = vset.pattern.permute.xlu0 %v1495_v56  ;;  %1316 = vset.pattern.permute.xlu1 %v1495_v56 }
  0x45   : > { %v430_v5 = vld [vmem:[%s420_s23] sm:$0xf]  ;;  %s1492_s17 = smov 120   ;;  %s413_s23 = scalar_lea.vmem %s1800_s0, %s1142_s14 }
  0x46   : > { %1187 = vmatpush3.bf16.msra.mxu0 %v1320_v3  ;;  %1195 = vmatpush3.bf16.msra.mxu1 %v1321_v4  ;;  %v431_v6 = vld [vmem:[%s424_s21] sm:$0xf]  ;;  %s1163_s15 = sshll.u32 %s1478_s30, 7  ;;  %s997_s21 = sshll.u32 %s409_s13, 4  ;;  %s998_s21 = int_to_ptr.vmem [resolvable:$true] %s997_s21 }
  0x47   : > { %1200 = vmatprep.subr.bf16.mxu0 %v1490_v0  ;;  %1206 = vmatprep.subr.bf16.mxu1 %v1490_v0 }
  0x49   : > { %1189 = vmatmul.mubr.msk.bf16.vlgmr.msra.gmra.mxu0 %vm456_vm1, %v430_v5  ;;  %1197 = vmatmul.mubr.msk.bf16.vlgmr.msra.gmra.mxu1 %vm456_vm1, %v431_v6 }
  0x4a   : > { %1202 = vmatprep.mubr.msk.bf16.mxu0 %vm1491_vm0, %v1490_v0  ;;  %1208 = vmatprep.mubr.msk.bf16.mxu1 %vm1491_vm0, %v1490_v0 }
 0x109   : > { %v494_v9 = vpop.f32.mrf.mxu0  ;;  %v560_v11 = vpop.f32.mrf.mxu1 }
 0x10a   : > { %v1708_v10 = vadd.f32 %v1145_v7, %v494_v9  ;;  %v561_v12 = vadd.f32 %v1149_v8, %v560_v11 }
 0x10b   : > { %v1190_v13 = vpop.f32.mrf.mxu0  ;;  %v1198_v15 = vpop.f32.mrf.mxu1 }
 0x10c   : > { %v578_v14 = vpack.c.bf16 %v1708_v10, %v1708_v10  ;;  %v579_v16 = vpack.c.bf16 %v561_v12, %v561_v12  ;;  %v1153_v3 = vmul.f32 -1.442695, %v1708_v10  ;;  %v899_v10 = vld [vmem:[%s413_s23] sm:$0xff] }
 0x10d   : > { %v497_v17 = vpop.f32.mrf.mxu0  ;;  %v563_v18 = vpop.f32.mrf.mxu1 }
 0x10e   : > { %640 = vrot.lane.b32.xlu1 %v578_v14, %s1492_s17  ;;  %643 = vrot.lane.b32.xlu0 %v579_v16, %s1492_s17  ;;  %v585_v20 = vsel %vm580_vm2, %v579_v16, 0  ;;  %s995_s17 = scalar_lea.hbm %s1808_s8, %s1163_s15 }
 0x10f   : > { %v1191_v19 = vpop.f32.mrf.mxu0  ;;  %v1199_v21 = vpop.f32.mrf.mxu1  ;;  %1201 = vmatpush3.bf16.xpose.msra.mxu0 %v585_v20 }
 0x110   : > { %1212 = vmatprep.subr.bf16.mxu0 %v1490_v0 }
 0x112   : > { %767 = vrot.lane.b32.xlu1 %v579_v16, %s1493_s26  ;;  %705 = vrot.lane.b32.xlu0 %v579_v16, %s1494_s11  ;;  %v831_v16 = vlaneseq }
 0x114   : > { %v832_v18 = vand.u32 127, %v831_v16 }
 0x116   : > { %765 = vrot.lane.b32.xlu1 %v578_v14, %s1493_s26  ;;  %703 = vrot.lane.b32.xlu0 %v578_v14, %s1494_s11  ;;  %vm889_vm8 = vcmp.lt.s32.totalorder %v832_v18, 16  ;;  %s982_s26 = scalar_lea.sflag [#allocation7], %s1652_s7  ;;  %s1402_s11 = scalar_lea.vmem %s998_s21, 128 }
 0x117   : > { %1203 = vmatmul.mubr.msk.bf16.vlgmr.msra.gmra.mxu0 %vm580_vm2, %v578_v14  ;;  %p1403_p1 = scmp.ne.s32.totalorder %s998_s21, %s1402_s11 }
 0x118   : > { %1214 = vmatprep.mubr.msk.bf16.mxu0 %vm1491_vm0, %v1490_v0 }
 0x119   : > { %p1404_p13 = pnand %p1403_p1, %p1629_p0 }
 0x11b   : > { %p1405_p11 = pneg %p1404_p13 }
 0x180   : > { %v644_v22 = vpop.permute.xlu0 %643  ;;  %v641_v23 = vpop.permute.xlu1 %640 }
 0x181   : > { %v649_v24 = vsel %vm580_vm2, %v644_v22, 0 }
 0x182   : > { %1207 = vmatpush3.bf16.xpose.msra.mxu1 %v649_v24 }
 0x183   : > { %1218 = vmatprep.subr.bf16.mxu1 %v1490_v0 }
 0x184   : > { %v706_v25 = vpop.permute.xlu0 %705  ;;  %v768_v27 = vpop.permute.xlu1 %767 }
 0x185   : > { %v711_v26 = vsel %vm580_vm2, %v706_v25, 0  ;;  %v773_v28 = vsel %vm580_vm2, %v768_v27, 0 }
 0x186   : > { %1213 = vmatpush3.bf16.xpose.msra.mxu0 %v711_v26 }
 0x187   : > { %1224 = vmatprep.subr.bf16.mxu0 %v1490_v0 }
 0x188   : > { %v704_v29 = vpop.permute.xlu0 %703  ;;  %v766_v30 = vpop.permute.xlu1 %765 }
 0x189   : > { %1209 = vmatmul.mubr.msk.bf16.vlgmr.msra.gmra.mxu1 %vm580_vm2, %v641_v23 }
 0x18a   : > { %1219 = vmatpush3.bf16.xpose.msra.mxu1 %v773_v28  ;;  %1220 = vmatprep.mubr.msk.bf16.mxu1 %vm1491_vm0, %v1490_v0 }
 0x18b   : > { %1230 = vmatprep.subr.bf16.mxu1 %v1490_v0 }
 0x18d   : > { %1215 = vmatmul.mubr.msk.bf16.vlgmr.msra.gmra.mxu0 %vm580_vm2, %v704_v29 }
 0x18e   : > { %1226 = vmatprep.mubr.msk.bf16.mxu0 %vm1491_vm0, %v1490_v0 }
 0x191   : > { %1221 = vmatmul.mubr.msk.bf16.vlgmr.msra.gmra.mxu1 %vm580_vm2, %v766_v30 }
 0x192   : > { %1232 = vmatprep.mubr.msk.bf16.mxu1 %vm1491_vm0, %v1490_v0 }
 0x1d7   : > { %v621_v31 = vpop.f32.mrf.mxu0 }
 0x1d8   : > { %v627_v32 = vsel %vm580_vm2, %v621_v31, -inf }
 0x1d9   : > { %628 = vmax.xlane.f32.xlu0 %v627_v32  ;;  %v1204_v33 = vpop.f32.mrf.mxu0 }
 0x1db   : > { %v624_v34 = vpop.f32.mrf.mxu0 }
 0x1dd   : > { %v1205_v35 = vpop.f32.mrf.mxu0 }
 0x249   : > { %v685_v36 = vpop.f32.mrf.mxu1 }
 0x24a   : > { %v691_v37 = vsel %vm580_vm2, %v685_v36, -inf }
 0x24b   : > { %692 = vmax.xlane.f32.xlu1 %v691_v37  ;;  %v1210_v38 = vpop.f32.mrf.mxu1 }
 0x24d   : > { %v688_v39 = vpop.f32.mrf.mxu1  ;;  %v747_v40 = vpop.f32.mrf.mxu0 }
 0x24e   : > { %v753_v41 = vsel %vm580_vm2, %v747_v40, -inf }
 0x24f   : > { %v1211_v42 = vpop.f32.mrf.mxu1  ;;  %754 = vmax.xlane.f32.xlu0 %v753_v41  ;;  %v1216_v43 = vpop.f32.mrf.mxu0 }
 0x251   : > { %v750_v44 = vpop.f32.mrf.mxu0  ;;  %v809_v45 = vpop.f32.mrf.mxu1 }
 0x252   : > { %v815_v46 = vsel %vm580_vm2, %v809_v45, -inf }
 0x253   : > { %v1222_v47 = vpop.f32.mrf.mxu1  ;;  %816 = vmax.xlane.f32.xlu0 %v815_v46  ;;  %v1217_v48 = vpop.f32.mrf.mxu0 }
 0x255   : > { %v812_v49 = vpop.f32.mrf.mxu1 }
 0x257   : > { %v1223_v50 = vpop.f32.mrf.mxu1 }
 0x262   : > { %v629_v51 = vpop.xlane.xlu0 %628 }
 0x263   : > { %v630_v52 = vsub.f32 %v621_v31, %v629_v51 }
 0x265   : > { %v631_v53 = vmul.f32 1.442695, %v630_v52 }
 0x267   : > { %1322 = vpow2.f32 %v631_v53 }
 0x274   : > { %v1736_v54 = vpop.eup %1322 }
 0x275   : > { %v633_v55 = vsel %vm580_vm2, %v1736_v54, 0.0 }
 0x276   : > { %634 = vadd.xlane.f32.xlu1 %v633_v55 }
 0x2d4   : > { %v693_v57 = vpop.xlane.xlu1 %692 }
 0x2d5   : > { %v694_v58 = vsub.f32 %v685_v36, %v693_v57 }
 0x2d7   : > { %v695_v59 = vmul.f32 1.442695, %v694_v58 }
 0x2d8   : > { %v755_v60 = vpop.xlane.xlu0 %754 }
 0x2d9   : > { %1324 = vpow2.f32 %v695_v59  ;;  %v756_v61 = vsub.f32 %v747_v40, %v755_v60  ;;  %v970_v59 = vld [vmem:[%s1658_s9] sm:$0xff]  ;;  %s1497_s9 = smov [#allocation10]  }
 0x2da   : > { %s1406_s14 = sshll.u32 %s1497_s9, 4  ;;  %s1407_s14 = int_to_ptr.vmem [resolvable:$false] %s1406_s14 }
 0x2db   : > { %v757_v62 = vmul.f32 1.442695, %v756_v61  ;;  %s1408_s30 = scalar_lea.vmem %s1407_s14, 256  ;;  %p1409_p2 = scmp.lt.s32.totalorder %s998_s21, %s1407_s14 }
 0x2dc   : > { %v817_v63 = vpop.xlane.xlu0 %816  ;;  %p1410_p12 = scmp.lt.s32.totalorder %s1408_s30, %s1402_s11 }
 0x2dd   : > { %1326 = vpow2.f32 %v757_v62  ;;  %v818_v1 = vsub.f32 %v809_v45, %v817_v63 }
 0x2de   : > { %p1411_p3 = por %p1410_p12, %p1409_p2 }
 0x2df   : > { %v819_v2 = vmul.f32 1.442695, %v818_v1 }
 0x2e0   : > { %p1412_p5 = pnand %p1411_p3, %p1405_p11 }
 0x2e1   : > { %1328 = vpow2.f32 %v819_v2 }
 0x2e2   : > { %1330 = vpow2.f32 %v1153_v3 }
 0x2e6   : > { %v1325_v4 = vpop.eup %1324 }
 0x2e7   : > { %v697_v5 = vsel %vm580_vm2, %v1325_v4, 0.0 }
 0x2e8   : > { %698 = vadd.xlane.f32.xlu0 %v697_v5 }
 0x2ea   : > { %v1327_v6 = vpop.eup %1326 }
 0x2eb   : > { %v759_v7 = vsel %vm580_vm2, %v1327_v6, 0.0 }
 0x2ec   : > { %760 = vadd.xlane.f32.xlu1 %v759_v7 }
 0x2ee   : > { %v1329_v8 = vpop.eup %1328 }
 0x2ef   : > { %v821_v9 = vsel %vm580_vm2, %v1329_v8, 0.0  ;;  %v1331_v11 = vpop.eup %1330 }
 0x2f0   : > { %822 = vadd.xlane.f32.xlu0 %v821_v9  ;;  %v569_v12 = vadd.f32 1.0, %v1331_v11 }
 0x2f2   : > { %1332 = vrcp.f32 %v569_v12 }
 0x2fd   : > { %834 = vperm.xlu1 %1316, %v899_v10  }
 0x2ff   : > { %v1333_v13 = vpop.eup %1332  ;;  %v635_v14 = vpop.xlane.xlu1 %634 }
 0x306   : > { %906 = vperm.xlu0 %1317, %v899_v10  }
 0x30a   : > { %573 = vrot.lane.b32.xlu0 %v1333_v13, %s1496_s16 }
 0x371   : > { %v699_v15 = vpop.xlane.xlu0 %698 }
 0x372   : > { %1334 = vrcp.f32 %v699_v15 }
 0x373   : > { %1336 = vrcp.f32 %v635_v14 }
 0x375   : > { %v761_v17 = vpop.xlane.xlu1 %760 }
 0x376   : > { %1338 = vrcp.f32 %v761_v17 }
 0x379   : > { %v823_v19 = vpop.xlane.xlu0 %822  ;;  %v835_v20 = vpop.permute.xlu1 %834 }
 0x37a   : > { %1340 = vrcp.f32 %v823_v19  ;;  %vm836_vm3 = vcmp.eq.s32.totalorder %v832_v18, %v835_v20 }
 0x37b   : > { %v1158_v21 = vsel %vm836_vm3, 1.0, %v1490_v0 }
 0x37c   : > { %v839_v22 = vpack.c.bf16 %v1158_v21, %v1158_v21 }
 0x37e   : > { %v845_v23 = vsel %vm843_vm4, %v839_v22, 0 }
 0x37f   : > { %v1335_v24 = vpop.eup %1334  ;;  %1225 = vmatpush3.bf16.msra.mxu0 %v845_v23 }
 0x380   : > { %v1337_v25 = vpop.eup %1336  ;;  %v701_v27 = vmul.f32 %v1335_v24, %v1325_v4 }
 0x381   : > { %v907_v26 = vpop.permute.xlu0 %906  ;;  %v637_v30 = vmul.f32 %v1337_v25, %v1736_v54 }
 0x382   : > { %vm908_vm5 = vcmp.eq.s32.totalorder %v832_v18, %v907_v26 }
 0x383   : > { %v1339_v28 = vpop.eup %1338  ;;  %v1160_v29 = vsel %vm908_vm5, 1.0, %v1490_v0  ;;  %v702_v34 = vadd.f32 %v701_v27, %v637_v30 }
 0x384   : > { %v763_v31 = vmul.f32 %v1339_v28, %v1327_v6  ;;  %v911_v32 = vpack.c.bf16 %v1160_v29, %v1160_v29 }
 0x385   : > { %v574_v33 = vpop.permute.xlu0 %573 }
 0x386   : > { %577 = vst.msk [vmem:[#allocation3] sm:$0xff] %vm576_vm6, %v574_v33  ;;  %v919_v35 = vsel %vm843_vm4, %v911_v32, 0  ;;  %v764_v38 = vadd.f32 %v763_v31, %v702_v34 }
 0x387   : > { %v1341_v36 = vpop.eup %1340  ;;  %1231 = vmatpush3.bf16.msra.mxu1 %v919_v35 }
 0x388   : > { %v825_v37 = vmul.f32 %v1341_v36, %v1329_v8 }
 0x38a   : > { %v826_v39 = vadd.f32 %v825_v37, %v764_v38 }
 0x38c   : > { %v827_v40 = vmul.f32 0.25, %v826_v39 }
 0x38d   : > { %v971_v53 = vld [vmem:[#allocation3] sm:$0xff] }
 0x38e   : > { %v828_v41 = vpack.c.bf16 %v827_v40, %v827_v40 }
 0x390   : > { %830 = vst.msk [vmem:[#allocation2] sm:$0xf] %vm829_vm7, %v828_v41  ;;  %1227 = vmatmul.mubr.msk.bf16.vlgmr.msra.gmra.mxu0 %vm580_vm2, %v828_v41 }
 0x397   : > { %v912_v0 = vld [vmem:[#allocation2] sm:$0xf] }
 0x398   : > { %1233 = vmatmul.mubr.msk.bf16.vlgmr.msra.gmra.mxu1 %vm580_vm2, %v912_v0 }
 0x450   : > { %v881_v42 = vpop.f32.mrf.mxu0 }
 0x451   : > { %v887_v43 = vmul.f32 1.442695, %v881_v42 }
 0x452   : > { %v1228_v44 = vpop.f32.mrf.mxu0 }
 0x453   : > { %1342 = vpow2.f32 %v887_v43 }
 0x454   : > { %v884_v45 = vpop.f32.mrf.mxu0 }
 0x456   : > { %v1229_v46 = vpop.f32.mrf.mxu0 }
 0x458   : > { %v955_v47 = vpop.f32.mrf.mxu1 }
 0x459   : > { %v961_v57 = vmul.f32 1.442695, %v955_v47 }
 0x45a   : > { %v1234_v48 = vpop.f32.mrf.mxu1 }
 0x45c   : > { %v958_v49 = vpop.f32.mrf.mxu1 }
 0x45e   : > { %v1235_v50 = vpop.f32.mrf.mxu1 }
 0x460   : > { %v1343_v51 = vpop.eup %1342 }
 0x461   : > { %v892_v52 = vsel %vm889_vm8, %v1343_v51, 0.0 }
 0x462   : > { %893 = vadd.xlane.f32.xlu1 %v892_v52 }
 0x473   : > { %975 = vperm.xlu1 %1316, %v971_v53  }
 0x4eb   : > { %v894_v54 = vpop.xlane.xlu1 %893 }
 0x4ec   : > { %1344 = vrcp.f32 %v894_v54 }
 0x4ed   : > { %1346 = vpow2.f32 %v961_v57 }
 0x4ef   : > { %v976_v63 = vpop.permute.xlu1 %975 }
 0x4f9   : > { %v1345_v55 = vpop.eup %1344 }
 0x4fa   : > { %898 = vst.msk [vmem:[#allocation4] sm:$0xff] %vm576_vm6, %v1345_v55  ;;  %v1347_v58 = vpop.eup %1346 }
 0x501   : > { %v963_v56 = vld [vmem:[#allocation4] sm:$0xff] }
 0x502   : > { %966 = vperm.xlu0 %1317, %v963_v56  }
 0x57d   : > { %v967_v60 = vpop.permute.xlu0 %966 }
 0x57e   : > { %v969_v61 = vmul.f32 %v1347_v58, %v967_v60 }
 0x580   : > { %v972_v62 = vsub.f32 %v969_v61, %v970_v59 }
 0x582   : > { %v978_v1 = vmul.f32 %v976_v63, %v972_v62 }
 0x584   : > { %v979_v2 = vadd.f32 %v978_v1, %v970_v59 }
 0x586   : > { %980 = vst [vmem:[%s409_s13] sm:$0xff] %v979_v2 }
 0x587   : > { %1415 = shalt.err (!%p1412_p5)
}
 0x588   : > { %s1416_s18 = scalar_lea.hbm %s995_s17, 128  ;;  %s1420_s19 = scalar_lea.hbm %s1808_s8, 256 }
 0x589   : > { %p1417_p7 = scmp.ne.s32.totalorder %s995_s17, %s1416_s18  ;;  %p1421_p10 = scmp.lt.s32.totalorder %s995_s17, %s1808_s8 }
 0x58a   : > { %p1422_p9 = scmp.lt.s32.totalorder %s1420_s19, %s1416_s18 }
 0x58b   : > { %p1418_p6 = pnand %p1417_p7, %p1629_p0 }
 0x58c   : > { %p1423_p8 = por %p1422_p9, %p1421_p10 }
 0x58d   : > { %p1419_p4 = pneg %p1418_p6 }
 0x58f   : > { %p1424_p1 = pnand %p1423_p8, %p1419_p4 }
 0x591   : > { %1427 = shalt.err (!%p1424_p1)
}
 0x592   : > { %1242 = dma.vmem_to_hbm [thread:$0]  (%p1629_p0), %s998_s21, 128, %s995_s17, %s982_s26  }
 0x593 PF: > { %s1827_s15 = sld [smem:[#allocation15_spill]]  ;;  %s1009_s13 = sand.u32 1, %s1466_s27  }
 0x594   : > { %p1829_p11 = scmp.ge.s32.totalorder %s1486_s10, 2  ;;  %s1010_s24 = scalar_lea.sflag [#allocation7], %s1009_s13 }
 0x599   : > { %p1828_p13 = scmp.ne.s32.totalorder %s1827_s15, 0 }
 0x59b   : > { %p1253_p2 = pnand %p1829_p11, %p1828_p13 }
 0x59d   : > { %p1254_p12 = pneg %p1253_p2 }
 0x59f   : > { %1461 = dma.done.wait (%p1254_p12), %s1010_s24, 128  }
 0x5a0   : > { %1463 = vsyncadd (%p1254_p12), %s1010_s24, 4294967168  ;;  %s25_s10 = sadd.s32 1, %s1486_s10   ;;  %s1830_s30 = sld [smem:[#allocation14_spill]] }
 0x5a1   : > { %p22_p3 = scmp.ge.s32.totalorder %s25_s10, 4   ;;  %s1831_s9 = sld [smem:[#allocation16_spill]] }
 0x5a2   : > { %s1832_s27 = smov %s1470_s28  ;;  %s1833_s28 = smov %s1474_s29 }
 0x5a3   : > { %s1834_s29 = smov %s1635_s20  ;;  %24 = sbr.rel (!%p22_p3) target bundleno = 9 (0x9), region = 114 }
 0x5a8   :  { %1015 = vsyncpa [#allocation6], 1 }
 0x5a9   :  { %1017 = vsyncpa [#allocation6 + $0x1], 1 }
 0x5aa   :  { %1018 = vsyncpa [#allocation9], 1 }
 0x5ab   :  { %1019 = vsyncpa [#allocation7], 1 }
 0x5ac   :  { %1021 = vsyncpa [#allocation7 + $0x1], 1 }

</bundles_post_ra>
